<compile_context>
chip_gen: v5e
topology: v5e:2x2
jax: 0.10.0
libtpu: 0.0.40
codegen_flags: <defaults>
</compile_context>

<pallas_src>
import jax
import jax.numpy as jnp
from jax.experimental import pallas as pl
from jax.experimental.pallas import tpu as pltpu


def _round_up(x, m):
    return ((x + m - 1) // m) * m


_TM_CANDIDATES = (2048, 1024, 512, 256, 128, 64, 32, 16)


def _vmem_capacity_bytes():
    """Physical (per-TensorCore) VMEM capacity; conservative fallback."""
    try:
        info = pltpu.get_tpu_info()
        cap = getattr(info, "vmem_capacity_bytes", None)
        if cap:
            return int(cap)
    except Exception:
        pass
    return 64 * 1024 * 1024  # assume the smallest (v7x-like) part if unknown


def _vmem_params():
    """(tile-sizing budget, vmem_limit_bytes, small_vmem_part?)"""
    cap = _vmem_capacity_bytes()
    if cap >= 100 * 1024 * 1024:
        # 128 MiB parts (v5e / v6e): use most of it for bigger row tiles.
        return 72 * 1024 * 1024, 96 * 1024 * 1024, False
    # 64 MiB-per-TC parts (v7x): leave headroom, <= ~48 MiB scoped.
    return 28 * 1024 * 1024, 48 * 1024 * 1024, True


def _pick_tm(M, E, itemsize, budget, *, force_two_tiles):
    """Largest row tile whose working set fits the generation's VMEM budget."""
    # Resident weight halves + bias, counted ONCE (single-buffered).
    w_bytes = (2 * E * E + E) * itemsize
    tm = _TM_CANDIDATES[-1]
    for cand in _TM_CANDIDATES:
        act = 2 * 3 * cand * E * itemsize   # mix + itf + out, double-buffered
        act += cand * E * 4                 # f32 accumulator tile
        if w_bytes + act <= budget:
            tm = cand
            break
    # Never tile wider than the (16-rounded) row count; multiple of 16 keeps
    # bf16 sublane packing legal if inputs are ever bf16.
    tm = min(tm, _round_up(M, 16))
    if force_two_tiles:
        # Keep grid_m >= 2 so both v7x TensorCores get row work under
        # dimension_semantics=("parallel",).
        tm = min(tm, max(16, _round_up(pl.cdiv(M, 2), 16)))
    return max(16, tm)


def _spec(block_shape, index_map, buffers=None):
    """BlockSpec helper; uses pipeline_mode=pl.Buffered(n) when requested."""
    if buffers is not None:
        try:
            return pl.BlockSpec(block_shape, index_map,
                                pipeline_mode=pl.Buffered(buffers))
        except (TypeError, AttributeError):
            pass  # older Pallas without pipeline_mode: fall back to default
    return pl.BlockSpec(block_shape, index_map)


def _concat1_kernel(mix_ref, itf_ref, wm_ref, wi_ref, b_ref, o_ref):
    """One row tile: two accumulating K=E MXU matmuls + f32 bias add."""
    acc = jnp.dot(mix_ref[...], wm_ref[...], preferred_element_type=jnp.float32)
    acc = acc + jnp.dot(itf_ref[...], wi_ref[...],
                        preferred_element_type=jnp.float32)
    acc = acc + b_ref[...].astype(jnp.float32)
    o_ref[...] = acc.astype(o_ref.dtype)


def concat1_forward(mixtures, itf_speaker, weight_t, bias, *, tm=None):
    """Concat1 forward.

    mixtures, itf_speaker : [B, L, E]
    weight_t              : [2E, E]  (pre-transposed nn.Linear(2E, E).weight)
    bias                  : [E]
    returns               : [B, L, E]
    """
    B, L, E = mixtures.shape
    M = B * L
    assert weight_t.shape == (2 * E, E)
    assert bias.shape == (E,)

    itemsize = jnp.dtype(mixtures.dtype).itemsize
    budget, vmem_limit, small_vmem = _vmem_params()
    if tm is None:
        tm = _pick_tm(M, E, itemsize, budget, force_two_tiles=small_vmem)

    # Contiguous row-slices of the pre-transposed weight: no transpose copy.
    w_mix_t = weight_t[:E]   # [E, E] == W[:, :E].T
    w_itf_t = weight_t[E:]   # [E, E] == W[:, E:].T

    mix2d = mixtures.reshape(M, E)
    itf2d = itf_speaker.reshape(M, E)
    b2d = bias.reshape(1, E)

    grid_m = pl.cdiv(M, tm)  # partial last tile is masked by Pallas edge handling

    cost = pl.CostEstimate(
        flops=2 * M * (2 * E) * E,
        transcendentals=0,
        bytes_accessed=(3 * M * E + 2 * E * E + E) * itemsize,
    )

    out = pl.pallas_call(
        _concat1_kernel,
        out_shape=jax.ShapeDtypeStruct((M, E), mixtures.dtype),
        grid_spec=pltpu.PrefetchScalarGridSpec(
            num_scalar_prefetch=0,
            grid=(grid_m,),
            in_specs=[
                _spec((tm, E), lambda i: (i, 0)),            # mixtures row tile
                _spec((tm, E), lambda i: (i, 0)),            # itf_speaker row tile
                _spec((E, E), lambda i: (0, 0), buffers=1),  # W[:, :E].T resident
                _spec((E, E), lambda i: (0, 0), buffers=1),  # W[:, E:].T resident
                _spec((1, E), lambda i: (0, 0), buffers=1),  # bias resident
            ],
            out_specs=pl.BlockSpec((tm, E), lambda i: (i, 0)),
        ),
        compiler_params=pltpu.CompilerParams(
            dimension_semantics=("parallel",),  # lets v7x split rows across 2 TCs
            vmem_limit_bytes=vmem_limit,
        ),
        cost_estimate=cost,
    )(mix2d, itf2d, w_mix_t, w_itf_t, b2d)

    return out.reshape(B, L, E)


if __name__ == "__main__":
    B, L, E = 2, 8, 32

    key = jax.random.PRNGKey(0)
    k_mix, k_itf, k_w, k_b = jax.random.split(key, 4)

    mixtures = jax.random.normal(k_mix, (B, L, E), dtype=jnp.float32)
    itf_speaker = jax.random.normal(k_itf, (B, L, E), dtype=jnp.float32)

    # Deterministic nn.Linear(2E, E)-style init: U(-1/sqrt(2E), 1/sqrt(2E)).
    bound = 1.0 / jnp.sqrt(2.0 * E)
    weight = jax.random.uniform(k_w, (E, 2 * E), minval=-bound, maxval=bound,
                                dtype=jnp.float32)
    bias = jax.random.uniform(k_b, (E,), minval=-bound, maxval=bound,
                              dtype=jnp.float32)

    # One-time layout change: store the linear weight pre-transposed [2E, E]
    # so the forward pass never materializes an HBM transpose per call.
    weight_t = jnp.asarray(weight.T)

    out = concat1_forward(mixtures, itf_speaker, weight_t, bias)
    out = jax.block_until_ready(out)

    # Pure-JAX reference matching the PyTorch forward exactly.
    ref = jnp.concatenate([mixtures, itf_speaker], axis=-1) @ weight.T + bias
    assert out.shape == (B, L, E)
    assert jnp.allclose(out, ref, atol=1e-5, rtol=1e-5)

    print("KERNEL_OK")
</pallas_src>

<mosaic_0001>
module attributes {stable_mosaic.version = 11 : i64} {
  func.func @_concat1_kernel(%arg0: i32, %arg1: memref<16x32xf32, #tpu.memory_space<vmem>>, %arg2: memref<16x32xf32, #tpu.memory_space<vmem>>, %arg3: memref<32x32xf32, #tpu.memory_space<vmem>>, %arg4: memref<32x32xf32, #tpu.memory_space<vmem>>, %arg5: memref<1x32xf32, #tpu.memory_space<vmem>>, %arg6: memref<16x32xf32, #tpu.memory_space<vmem>>) attributes {dimension_semantics = [#tpu.dimension_semantics<parallel>], iteration_bounds = array<i64: 1>, scalar_prefetch = 0 : i64, scratch_operands = 0 : i64, tpu.core_type = #tpu.core_type<tc>, window_params = [{transform_indices = @transform_0, window_bounds = array<i64: 16, 32>}, {transform_indices = @transform_1, window_bounds = array<i64: 16, 32>}, {pipeline_mode = #tpu.pipeline_mode<synchronous>, transform_indices = @transform_2, window_bounds = array<i64: 32, 32>}, {pipeline_mode = #tpu.pipeline_mode<synchronous>, transform_indices = @transform_3, window_bounds = array<i64: 32, 32>}, {pipeline_mode = #tpu.pipeline_mode<synchronous>, transform_indices = @transform_4, window_bounds = array<i64: 1, 32>}, {transform_indices = @transform_5, window_bounds = array<i64: 16, 32>}]} {
    %c0 = arith.constant 0 : index
    %c0_0 = arith.constant 0 : index
    %0 = vector.load %arg1[%c0, %c0_0] : memref<16x32xf32, #tpu.memory_space<vmem>>, vector<16x32xf32>
    %c0_1 = arith.constant 0 : index
    %c0_2 = arith.constant 0 : index
    %1 = vector.load %arg3[%c0_1, %c0_2] : memref<32x32xf32, #tpu.memory_space<vmem>>, vector<32x32xf32>
    %cst = arith.constant dense<0.000000e+00> : vector<16x32xf32>
    %2 = tpu.matmul %0, %1, %cst {dimension_numbers = #tpu.dot_dimension_numbers<[1], [0], [0], [1], [0, 0, 1, 1], [], []>} : vector<16x32xf32>, vector<32x32xf32>, vector<16x32xf32> -> vector<16x32xf32>
    %c0_3 = arith.constant 0 : index
    %c0_4 = arith.constant 0 : index
    %3 = vector.load %arg2[%c0_3, %c0_4] : memref<16x32xf32, #tpu.memory_space<vmem>>, vector<16x32xf32>
    %c0_5 = arith.constant 0 : index
    %c0_6 = arith.constant 0 : index
    %4 = vector.load %arg4[%c0_5, %c0_6] : memref<32x32xf32, #tpu.memory_space<vmem>>, vector<32x32xf32>
    %cst_7 = arith.constant dense<0.000000e+00> : vector<16x32xf32>
    %5 = tpu.matmul %3, %4, %cst_7 {dimension_numbers = #tpu.dot_dimension_numbers<[1], [0], [0], [1], [0, 0, 1, 1], [], []>} : vector<16x32xf32>, vector<32x32xf32>, vector<16x32xf32> -> vector<16x32xf32>
    %6 = arith.addf %2, %5 : vector<16x32xf32>
    %c0_8 = arith.constant 0 : index
    %c0_9 = arith.constant 0 : index
    %7 = vector.load %arg5[%c0_8, %c0_9] : memref<1x32xf32, #tpu.memory_space<vmem>>, vector<1x32xf32>
    %8 = vector.broadcast %7 : vector<1x32xf32> to vector<16x32xf32>
    %9 = arith.addf %6, %8 : vector<16x32xf32>
    %c0_10 = arith.constant 0 : index
    %c0_11 = arith.constant 0 : index
    %10 = vector.load %arg6[%c0_10, %c0_11] : memref<16x32xf32, #tpu.memory_space<vmem>>, vector<16x32xf32>
    tpu.vector_store %arg6[%c0_10, %c0_11], %9 {strides = array<i32>} : memref<16x32xf32, #tpu.memory_space<vmem>>, vector<16x32xf32>,
    return
  }
  func.func @transform_0(%arg0: i32) -> (i32, i32) {
    %c0_i32 = arith.constant 0 : i32
    %c0_i32_0 = arith.constant 0 : i32
    return %arg0, %c0_i32 : i32, i32
  }
  func.func @transform_1(%arg0: i32) -> (i32, i32) {
    %c0_i32 = arith.constant 0 : i32
    %c0_i32_0 = arith.constant 0 : i32
    return %arg0, %c0_i32 : i32, i32
  }
  func.func @transform_2(%arg0: i32) -> (i32, i32) {
    %c0_i32 = arith.constant 0 : i32
    %c0_i32_0 = arith.constant 0 : i32
    %c0_i32_1 = arith.constant 0 : i32
    return %c0_i32, %c0_i32_0 : i32, i32
  }
  func.func @transform_3(%arg0: i32) -> (i32, i32) {
    %c0_i32 = arith.constant 0 : i32
    %c0_i32_0 = arith.constant 0 : i32
    %c0_i32_1 = arith.constant 0 : i32
    return %c0_i32, %c0_i32_0 : i32, i32
  }
  func.func @transform_4(%arg0: i32) -> (i32, i32) {
    %c0_i32 = arith.constant 0 : i32
    %c0_i32_0 = arith.constant 0 : i32
    %c0_i32_1 = arith.constant 0 : i32
    return %c0_i32, %c0_i32_0 : i32, i32
  }
  func.func @transform_5(%arg0: i32) -> (i32, i32) {
    %c0_i32 = arith.constant 0 : i32
    %c0_i32_0 = arith.constant 0 : i32
    return %arg0, %c0_i32 : i32, i32
  }
}

</mosaic_0001>

<bundles_post_ra>
// kernel: tpu_custom_call.1
= control target key start
LH: loop header
LB: loop body
LE: loop exit
PB: predicated region body
PF: predicated region fallthrough
CT: control target
= control target key end

     0   :  { %10 = vsyncpa [#allocation3], 0  ;;  %s408_s0 = inlined_call_operand.hbm [shape: f32[16,32], index: 0, kind: input, shape index: {}]   ;;  %s409_s1 = inlined_call_operand.hbm [shape: f32[16,32], index: 1, kind: input, shape index: {}]   ;;  %s410_s2 = inlined_call_operand.hbm [shape: f32[32,32], index: 2, kind: input, shape index: {}]   ;;  %s411_s3 = inlined_call_operand.hbm [shape: f32[32,32], index: 3, kind: input, shape index: {}]   ;;  %s412_s4 = inlined_call_operand.vmem [shape: f32[1,32], index: 4, kind: input, shape index: {}]   ;;  %s413_s5 = inlined_call_operand.hbm [shape: f32[16,32], index: 5, kind: output, shape index: {}]  }
   0x1   :  { %11 = vsyncpa [#allocation6], 0 }
   0x2   :  { %12 = vsyncpa [#allocation9], 0 }
   0x3   :  { %13 = vsyncpa [#allocation4], 0  ;;  %s31_s20 = sshll.u32 %s409_s1, 4  ;;  %s332_s21 = smov [#allocation5]   ;;  %s32_s20 = int_to_ptr.hbm [resolvable:$true] %s31_s20 }
   0x4   :  { %s33_s22 = sshll.u32 %s332_s21, 4  ;;  %s18_s25 = sshll.u32 %s408_s0, 4  ;;  %s34_s22 = int_to_ptr.vmem [resolvable:$true] %s33_s22  ;;  %s19_s25 = int_to_ptr.hbm [resolvable:$true] %s18_s25 }
   0x5   :  { %s333_s26 = smov 128   ;;  %s334_s27 = smov 8  }
   0x6   :  { %39 = dma.hbm_to_vmem [thread:$0]  %s32_s20, 256, %s34_s22, [#allocation6], %s333_s26, %s333_s26, %s334_s27  }
   0x7   :  { %s335_s28 = smov [#allocation2]   ;;  %s44_s1 = sshll.u32 %s410_s2, 4  ;;  %s45_s1 = int_to_ptr.hbm [resolvable:$true] %s44_s1 }
   0x8   :  { %s20_s29 = sshll.u32 %s335_s28, 4  ;;  %s57_s8 = sshll.u32 %s411_s3, 4  ;;  %s21_s29 = int_to_ptr.vmem [resolvable:$true] %s20_s29  ;;  %s58_s8 = int_to_ptr.hbm [resolvable:$true] %s57_s8 }
   0x9   :  { %26 = dma.hbm_to_vmem [thread:$0]  %s19_s25, 256, %s21_s29, [#allocation3], %s333_s26, %s333_s26, %s334_s27  }
   0xa   :  { %s336_s9 = smov [#allocation7]   ;;  %s337_s11 = smov [#allocation8]  }
   0xb   :  { %s46_s10 = sshll.u32 %s336_s9, 4  ;;  %s59_s2 = sshll.u32 %s337_s11, 4  ;;  %s47_s10 = int_to_ptr.vmem [resolvable:$true] %s46_s10  ;;  %s60_s2 = int_to_ptr.vmem [resolvable:$true] %s59_s2 }
   0xc   :  { %52 = dma.hbm_to_vmem [thread:$0]  %s45_s1, 512, %s47_s10, [#allocation6], %s333_s26, %s333_s26, %s334_s27  }
   0xd   :  { %65 = dma.hbm_to_vmem [thread:$0]  %s58_s8, 512, %s60_s2, [#allocation9], %s333_s26, %s333_s26, %s334_s27  }
   0xe   :  { %324 = dma.done.wait [#allocation3], 256  }
   0xf   :  { %325 = vsyncadd [#allocation3], 4294967040 }
  0x10   :  { %326 = dma.done.wait [#allocation6], 768  }
  0x11   :  { %327 = vsyncadd [#allocation6], 4294966528 }
  0x12   :  { %328 = dma.done.wait [#allocation9], 512  }
  0x13   :  { %329 = vsyncadd [#allocation9], 4294966784  ;;  %v95_v0 = vld [vmem:[#allocation8 + $0x18] sm:$0xff]  ;;  %v94_v2 = vld [vmem:[#allocation8 + $0x10] sm:$0xff]  ;;  %vm96_vm0 = vcmask 261120   ;;  %s338_s13 = smov [#allocation10]  }
  0x14   :  { %v89_v1 = vld [vmem:[#allocation7 + $0x18] sm:$0xff]  ;;  %188 = vmatpush.msra.mxu2 %v95_v0  ;;  %v88_v3 = vld [vmem:[#allocation7 + $0x10] sm:$0xff]  ;;  %v93_v4 = vld [vmem:[#allocation8 + $0x8] sm:$0xff]  ;;  %115 = vmatpush.msra.mxu0 %v95_v0  ;;  %s167_s14 = sshll.u32 %s338_s13, 4  ;;  %s169_s17 = sshll.u32 %s413_s5, 4  ;;  %s168_s14 = int_to_ptr.vmem [resolvable:$true] %s167_s14  ;;  %s170_s17 = int_to_ptr.hbm [resolvable:$true] %s169_s17 }
  0x15   :  { %192 = vmatpush.msra.mxu3 %v89_v1  ;;  %v87_v5 = vld [vmem:[#allocation7 + $0x8] sm:$0xff]  ;;  %144 = vmatpush.msra.mxu1 %v89_v1  ;;  %v92_v6 = vld [vmem:[#allocation8] sm:$0xff]  ;;  %v91_v8 = vld [vmem:[#allocation5 + $0x8] sm:$0xff] }
  0x16   :  { %189 = vmatpush.msra.mxu2 %v94_v2  ;;  %v86_v7 = vld [vmem:[#allocation7] sm:$0xff]  ;;  %116 = vmatpush.msra.mxu0 %v94_v2  ;;  %v85_v9 = vld [vmem:[#allocation2 + $0x8] sm:$0xff]  ;;  %v90_v10 = vld [vmem:[#allocation5] sm:$0xff] }
  0x17   :  { %193 = vmatpush.msra.mxu3 %v88_v3  ;;  %145 = vmatpush.msra.mxu1 %v88_v3  ;;  %v84_v11 = vld [vmem:[#allocation2] sm:$0xff] }
  0x18   :  { %190 = vmatpush.msra.mxu2 %v93_v4  ;;  %117 = vmatpush.msra.mxu0 %v93_v4  ;;  %v203_v12 = vld [vmem:[%s412_s4] ss:$0 sm:$0xff] }
  0x19   :  { %194 = vmatpush.msra.mxu3 %v87_v5  ;;  %146 = vmatpush.msra.mxu1 %v87_v5 }
  0x1a   :  { %191 = vmatpush.msra.mxu2 %v92_v6  ;;  %118 = vmatpush.msra.mxu0 %v92_v6 }
  0x1b   :  { %195 = vmatpush.msra.mxu3 %v86_v7  ;;  %185 = vmatmul.msk.f32.vlgmr.msra.gmra.mxu2 %vm96_vm0, %v91_v8 }
  0x1c   :  { %187 = vmatmul.msk.f32.vlgmr.msra.gmra.mxu3 %vm96_vm0, %v85_v9  ;;  %147 = vmatpush.msra.mxu1 %v86_v7 }
  0x1d   :  { %184 = vmatmul.msk.f32.vlgmr.msra.gmra.mxu0 %vm96_vm0, %v90_v10  ;;  %186 = vmatmul.msk.f32.vlgmr.msra.gmra.mxu1 %vm96_vm0, %v84_v11 }
  0x9a   :  { %v120_v13 = vpop.f32.mrf.mxu0  ;;  %v149_v14 = vpop.f32.mrf.mxu1 }
  0x9b   :  { %v150_v15 = vadd.f32 %v149_v14, %v120_v13 }
  0x9d   :  { %v159_v16 = vadd.f32 %v203_v12, %v150_v15 }
  0x9e   :  { %v123_v17 = vpop.f32.mrf.mxu2 }
  0x9f   :  { %v152_v18 = vpop.f32.mrf.mxu3  ;;  %161 = vst.msk [vmem:[#allocation10] sm:$0xff] %vm96_vm0, %v159_v16 }
  0xa0   :  { %v153_v19 = vadd.f32 %v152_v18, %v123_v17 }
  0xa2   :  { %v160_v20 = vadd.f32 %v203_v12, %v153_v19 }
  0xa4   :  { %162 = vst.msk [vmem:[#allocation10 + $0x8] sm:$0xff] %vm96_vm0, %v160_v20 }
  0xa5   :  { %175 = dma.vmem_to_hbm [thread:$0]  %s168_s14, 256, %s170_s17, [#allocation4], %s333_s26, %s333_s26, %s334_s27  }
  0xa6   :  { %330 = dma.done.wait [#allocation4], 256  }
  0xa7   :  { %331 = vsyncadd [#allocation4], 4294967040 }
  0xa8   :  { %180 = vsyncpa [#allocation3], 1 }
  0xa9   :  { %181 = vsyncpa [#allocation6], 1 }
  0xaa   :  { %182 = vsyncpa [#allocation9], 1 }
  0xab   :  { %183 = vsyncpa [#allocation4], 1 }

</bundles_post_ra>
